<compile_context>
chip_gen: v7x
topology: tpu7x:2x2x1
jax: 0.10.0
libtpu: 0.0.40
codegen_flags: <defaults>
</compile_context>

<pallas_src>
import functools

import jax
import jax.numpy as jnp
from jax.experimental import pallas as pl
from jax.experimental.pallas import tpu as pltpu


def policy_mlp_kernel(x_ref, w1_ref, b1_ref, w2_ref, b2_ref, wh_ref, bh_ref,
                      out_ref, *, obs_dims, act_dims):
    """Fused PolicyNetwork forward for one feature-major batch tile.

    x_ref : (obs_dims, TB)      w1_ref : (64, obs_dims)   b1_ref : (64, 1)
    w2_ref: (32, 64)            b2_ref : (32, 1)
    wh_ref: (2*act, 32)         bh_ref : (2*act, 1)
    out_ref[:act_dims, :] = mean ; out_ref[act_dims:, :] = std = exp(log_std)
    """
    x = x_ref[...]                                    # (obs, TB)
    w1 = w1_ref[...]                                  # (64, obs)

    # ---- fc1 on the VPU: K = obs_dims is tiny, so broadcast FMAs keep the MXU slot
    # free.  x[k:k+1, :] is a cheap sublane broadcast; w1[:, k:k+1] is a tiny
    # 64-element lane broadcast, done obs_dims (=3) times per tile.
    h1 = b1_ref[...] + w1[:, 0:1] * x[0:1, :]         # (64, TB)
    for k in range(1, obs_dims):                      # static unroll (obs_dims small)
        h1 = h1 + w1[:, k:k + 1] * x[k:k + 1, :]
    h1 = jnp.maximum(h1, 0.0)

    # ---- fc2 on the MXU, lane-dense result (N = TB)
    h2 = jnp.dot(w2_ref[...], h1, preferred_element_type=jnp.float32) + b2_ref[...]
    h2 = jnp.maximum(h2, 0.0)                         # (32, TB)

    # ---- fused heads: one matmul producing [mean ; log_std] stacked on sublanes
    heads = jnp.dot(wh_ref[...], h2, preferred_element_type=jnp.float32) + bh_ref[...]

    # exp() only on the log_std rows; zero the mean rows inside exp so huge mean logits
    # can't produce a (discarded) inf.  One full-tile, lane-dense packed store.
    row = jax.lax.broadcasted_iota(jnp.int32, heads.shape, 0)
    is_mean = row < act_dims
    packed = jnp.where(is_mean, heads, jnp.exp(jnp.where(is_mean, 0.0, heads)))
    out_ref[...] = packed.astype(out_ref.dtype)


def _choose_tb(batch, block_b):
    """Lane-dense batch tile: single tile for tiny batches; otherwise a multiple of
    128 lanes, capped at block_b, sized for >= 2 grid steps (v7x two-TC split)."""
    if batch <= 128:
        return batch                       # lane dim == full array extent is legal
    tb = min(block_b, -(-batch // 2))      # at least two grid steps
    return max(128, (tb // 128) * 128)


def prepare_kernel_params(p):
    """One-time conversion to the kernel's feature-major layout.

    Fuses the two heads (mean | log_std) into a single matmul and transposes all
    weights so the kernel computes W @ x with batch on the lane axis.  Done once at
    init, never in the RL inner loop.
    """
    wh = jnp.concatenate([p["wm"], p["ws"]], axis=1)          # (32, 2*act)
    bh = jnp.concatenate([p["bm"], p["bs"]], axis=1)          # (1, 2*act)
    return dict(
        w1t=p["w1"].T, b1=p["b1"].T,      # (64, obs), (64, 1)
        w2t=p["w2"].T, b2=p["b2"].T,      # (32, 64),  (32, 1)
        wht=wh.T,      bh=bh.T,           # (2*act, 32), (2*act, 1)
    )


def policy_forward(x, kparams, *, block_b=8192):
    """Batch-tiled pallas_call; returns (mean, std) like the torch module.

    `kparams` is the kernel-layout dict from prepare_kernel_params (feature-major
    weights, column biases, fused heads).
    """
    B, obs_dims = x.shape
    H1 = kparams["w1t"].shape[0]
    H2 = kparams["w2t"].shape[0]
    n_out = kparams["wht"].shape[0]
    act_dims = n_out // 2

    xt = x.T                                          # (obs, B): contiguous HBM rows

    TB = _choose_tb(B, block_b)
    grid = (pl.cdiv(B, TB),)

    # Weights/biases stay VMEM-resident across grid steps (constant block index).
    resident = lambda a: pl.BlockSpec(a.shape, lambda i: (0, 0))

    flops = 2 * B * (obs_dims * H1 + H1 * H2 + H2 * n_out)
    bytes_accessed = 4 * (x.size + sum(v.size for v in kparams.values()) + B * n_out)

    packed = pl.pallas_call(
        functools.partial(policy_mlp_kernel, obs_dims=obs_dims, act_dims=act_dims),
        out_shape=jax.ShapeDtypeStruct((n_out, B), jnp.float32),
        grid=grid,
        in_specs=[
            pl.BlockSpec((obs_dims, TB), lambda i: (0, i)),   # batch-tiled activations
            resident(kparams["w1t"]), resident(kparams["b1"]),
            resident(kparams["w2t"]), resident(kparams["b2"]),
            resident(kparams["wht"]), resident(kparams["bh"]),
        ],
        out_specs=pl.BlockSpec((n_out, TB), lambda i: (0, i)),
        compiler_params=pltpu.CompilerParams(
            # Only matters on v7x (2 TCs shard the batch grid); near-zero on v5e/v6e.
            dimension_semantics=("parallel",),
        ),
        cost_estimate=pl.CostEstimate(
            flops=flops,
            transcendentals=B * act_dims,
            bytes_accessed=bytes_accessed,
        ),
    )(xt, kparams["w1t"], kparams["b1"], kparams["w2t"], kparams["b2"],
      kparams["wht"], kparams["bh"])

    mean = packed[:act_dims, :].T                     # (B, act)
    std = packed[act_dims:, :].T                      # (B, act)
    return mean, std


def init_params(key, obs_dims, act_dims):
    """Deterministic synthetic parameters matching nn.Linear shapes.

    Torch stores Linear weights as (out, in); we keep them as (in, out) + (1, out)
    biases here, and prepare_kernel_params transposes once for the kernel.
    """
    ks = jax.random.split(key, 8)

    def lin(kw, kb, fan_in, fan_out):
        bound = 1.0 / jnp.sqrt(fan_in)
        w = jax.random.uniform(kw, (fan_in, fan_out), jnp.float32, -bound, bound)
        b = jax.random.uniform(kb, (1, fan_out), jnp.float32, -bound, bound)
        return w, b

    w1, b1 = lin(ks[0], ks[1], obs_dims, 64)
    w2, b2 = lin(ks[2], ks[3], 64, 32)
    wm, bm = lin(ks[4], ks[5], 32, act_dims)
    ws, bs = lin(ks[6], ks[7], 32, act_dims)
    return dict(w1=w1, b1=b1, w2=w2, b2=b2, wm=wm, bm=bm, ws=ws, bs=bs)


def reference_forward(x, p):
    """Pure-JAX reference for correctness check."""
    h1 = jnp.maximum(x @ p["w1"] + p["b1"], 0.0)
    h2 = jnp.maximum(h1 @ p["w2"] + p["b2"], 0.0)
    mean = h2 @ p["wm"] + p["bm"]
    std = jnp.exp(h2 @ p["ws"] + p["bs"])
    return mean, std


if __name__ == "__main__":
    # Pendulum-v1: obs dim 3, action dim 1.
    obs_dims, act_dims = 3, 1
    key = jax.random.PRNGKey(0)
    k_p, k_x1, k_x2, k_x3 = jax.random.split(key, 4)
    params = init_params(k_p, obs_dims, act_dims)
    kparams = prepare_kernel_params(params)           # hoisted out of the inner loop

    fwd = jax.jit(policy_forward, static_argnames=("block_b",))

    # Case 1: tiny batch -> single grid step (lane dim == full batch extent).
    x1 = jax.random.normal(k_x1, (8, obs_dims), jnp.float32)
    mean1, std1 = fwd(x1, kparams)
    jax.block_until_ready((mean1, std1))
    rm1, rs1 = reference_forward(x1, params)
    assert mean1.shape == (8, act_dims) and std1.shape == (8, act_dims)
    assert jnp.allclose(mean1, rm1, atol=1e-5, rtol=1e-5)
    assert jnp.allclose(std1, rs1, atol=1e-5, rtol=1e-5)

    # Case 2: two full 128-lane tiles -> grid (2,), exercises the batch pipeline and
    # the >= 2 "parallel" grid steps needed for the v7x two-TC split.
    x2 = jax.random.normal(k_x2, (256, obs_dims), jnp.float32)
    mean2, std2 = fwd(x2, kparams)
    jax.block_until_ready((mean2, std2))
    rm2, rs2 = reference_forward(x2, params)
    assert jnp.allclose(mean2, rm2, atol=1e-5, rtol=1e-5)
    assert jnp.allclose(std2, rs2, atol=1e-5, rtol=1e-5)

    # Case 3: ragged batch -> partial last tile (masked lane writeback path).
    x3 = jax.random.normal(k_x3, (200, obs_dims), jnp.float32)
    mean3, std3 = fwd(x3, kparams)
    jax.block_until_ready((mean3, std3))
    rm3, rs3 = reference_forward(x3, params)
    assert jnp.allclose(mean3, rm3, atol=1e-5, rtol=1e-5)
    assert jnp.allclose(std3, rs3, atol=1e-5, rtol=1e-5)

    # TODO(synk): bf16 weight/activation cast for very large rollout batches is
    # intentionally left out — at these feature sizes it is pure overhead.
    print("KERNEL_OK")
</pallas_src>

<mosaic_0001>
module attributes {stable_mosaic.version = 11 : i64} {
  func.func @policy_mlp_kernel(%arg0: i32, %arg1: memref<3x8xf32, #tpu.memory_space<vmem>>, %arg2: memref<64x3xf32, #tpu.memory_space<vmem>>, %arg3: memref<64x1xf32, #tpu.memory_space<vmem>>, %arg4: memref<32x64xf32, #tpu.memory_space<vmem>>, %arg5: memref<32x1xf32, #tpu.memory_space<vmem>>, %arg6: memref<2x32xf32, #tpu.memory_space<vmem>>, %arg7: memref<2x1xf32, #tpu.memory_space<vmem>>, %arg8: memref<2x8xf32, #tpu.memory_space<vmem>>) attributes {dimension_semantics = [#tpu.dimension_semantics<parallel>], iteration_bounds = array<i64: 1>, scalar_prefetch = 0 : i64, scratch_operands = 0 : i64, tpu.core_type = #tpu.core_type<tc>, window_params = [{transform_indices = @transform_0, window_bounds = array<i64: 3, 8>}, {pipeline_mode = #tpu.pipeline_mode<synchronous>, transform_indices = @transform_1, window_bounds = array<i64: 64, 3>}, {pipeline_mode = #tpu.pipeline_mode<synchronous>, transform_indices = @transform_2, window_bounds = array<i64: 64, 1>}, {pipeline_mode = #tpu.pipeline_mode<synchronous>, transform_indices = @transform_3, window_bounds = array<i64: 32, 64>}, {pipeline_mode = #tpu.pipeline_mode<synchronous>, transform_indices = @transform_4, window_bounds = array<i64: 32, 1>}, {pipeline_mode = #tpu.pipeline_mode<synchronous>, transform_indices = @transform_5, window_bounds = array<i64: 2, 32>}, {pipeline_mode = #tpu.pipeline_mode<synchronous>, transform_indices = @transform_6, window_bounds = array<i64: 2, 1>}, {transform_indices = @transform_7, window_bounds = array<i64: 2, 8>}]} {
    %c0 = arith.constant 0 : index
    %c0_0 = arith.constant 0 : index
    %0 = vector.load %arg1[%c0, %c0_0] : memref<3x8xf32, #tpu.memory_space<vmem>>, vector<3x8xf32>
    %c0_1 = arith.constant 0 : index
    %c0_2 = arith.constant 0 : index
    %1 = vector.load %arg2[%c0_1, %c0_2] : memref<64x3xf32, #tpu.memory_space<vmem>>, vector<64x3xf32>
    %c0_3 = arith.constant 0 : index
    %c0_4 = arith.constant 0 : index
    %2 = vector.load %arg3[%c0_3, %c0_4] : memref<64x1xf32, #tpu.memory_space<vmem>>, vector<64x1xf32>
    %3 = vector.extract_strided_slice %1 {offsets = [0, 0], sizes = [64, 1], strides = [1, 1]} : vector<64x3xf32> to vector<64x1xf32>
    %4 = vector.extract_strided_slice %0 {offsets = [0, 0], sizes = [1, 8], strides = [1, 1]} : vector<3x8xf32> to vector<1x8xf32>
    %5 = vector.broadcast %3 : vector<64x1xf32> to vector<64x8xf32>
    %6 = vector.broadcast %4 : vector<1x8xf32> to vector<64x8xf32>
    %7 = arith.mulf %5, %6 : vector<64x8xf32>
    %8 = vector.broadcast %2 : vector<64x1xf32> to vector<64x8xf32>
    %9 = arith.addf %8, %7 : vector<64x8xf32>
    %10 = vector.extract_strided_slice %1 {offsets = [0, 1], sizes = [64, 1], strides = [1, 1]} : vector<64x3xf32> to vector<64x1xf32>
    %11 = vector.extract_strided_slice %0 {offsets = [1, 0], sizes = [1, 8], strides = [1, 1]} : vector<3x8xf32> to vector<1x8xf32>
    %12 = vector.broadcast %10 : vector<64x1xf32> to vector<64x8xf32>
    %13 = vector.broadcast %11 : vector<1x8xf32> to vector<64x8xf32>
    %14 = arith.mulf %12, %13 : vector<64x8xf32>
    %15 = arith.addf %9, %14 : vector<64x8xf32>
    %16 = vector.extract_strided_slice %1 {offsets = [0, 2], sizes = [64, 1], strides = [1, 1]} : vector<64x3xf32> to vector<64x1xf32>
    %17 = vector.extract_strided_slice %0 {offsets = [2, 0], sizes = [1, 8], strides = [1, 1]} : vector<3x8xf32> to vector<1x8xf32>
    %18 = vector.broadcast %16 : vector<64x1xf32> to vector<64x8xf32>
    %19 = vector.broadcast %17 : vector<1x8xf32> to vector<64x8xf32>
    %20 = arith.mulf %18, %19 : vector<64x8xf32>
    %21 = arith.addf %15, %20 : vector<64x8xf32>
    %cst = arith.constant 0.000000e+00 : f32
    %22 = vector.broadcast %cst : f32 to vector<64x8xf32>
    %23 = arith.maximumf %21, %22 : vector<64x8xf32>
    %c0_5 = arith.constant 0 : index
    %c0_6 = arith.constant 0 : index
    %24 = vector.load %arg4[%c0_5, %c0_6] : memref<32x64xf32, #tpu.memory_space<vmem>>, vector<32x64xf32>
    %cst_7 = arith.constant dense<0.000000e+00> : vector<32x8xf32>
    %25 = tpu.matmul %24, %23, %cst_7 {dimension_numbers = #tpu.dot_dimension_numbers<[1], [0], [0], [1], [0, 0, 1, 1], [], []>} : vector<32x64xf32>, vector<64x8xf32>, vector<32x8xf32> -> vector<32x8xf32>
    %c0_8 = arith.constant 0 : index
    %c0_9 = arith.constant 0 : index
    %26 = vector.load %arg5[%c0_8, %c0_9] : memref<32x1xf32, #tpu.memory_space<vmem>>, vector<32x1xf32>
    %27 = vector.broadcast %26 : vector<32x1xf32> to vector<32x8xf32>
    %28 = arith.addf %25, %27 : vector<32x8xf32>
    %cst_10 = arith.constant 0.000000e+00 : f32
    %29 = vector.broadcast %cst_10 : f32 to vector<32x8xf32>
    %30 = arith.maximumf %28, %29 : vector<32x8xf32>
    %c0_11 = arith.constant 0 : index
    %c0_12 = arith.constant 0 : index
    %31 = vector.load %arg6[%c0_11, %c0_12] : memref<2x32xf32, #tpu.memory_space<vmem>>, vector<2x32xf32>
    %cst_13 = arith.constant dense<0.000000e+00> : vector<2x8xf32>
    %32 = tpu.matmul %31, %30, %cst_13 {dimension_numbers = #tpu.dot_dimension_numbers<[1], [0], [0], [1], [0, 0, 1, 1], [], []>} : vector<2x32xf32>, vector<32x8xf32>, vector<2x8xf32> -> vector<2x8xf32>
    %c0_14 = arith.constant 0 : index
    %c0_15 = arith.constant 0 : index
    %33 = vector.load %arg7[%c0_14, %c0_15] : memref<2x1xf32, #tpu.memory_space<vmem>>, vector<2x1xf32>
    %34 = vector.broadcast %33 : vector<2x1xf32> to vector<2x8xf32>
    %35 = arith.addf %32, %34 : vector<2x8xf32>
    %36 = tpu.iota {dimensions = array<i32: 0>} : vector<2x8xi32>
    %c1_i32 = arith.constant 1 : i32
    %37 = vector.broadcast %c1_i32 : i32 to vector<2x8xi32>
    %38 = arith.cmpi slt, %36, %37 : vector<2x8xi32>
    %cst_16 = arith.constant 0.000000e+00 : f32
    %39 = vector.broadcast %cst_16 : f32 to vector<2x8xf32>
    %40 = arith.select %38, %39, %35 : vector<2x8xi1>, vector<2x8xf32>
    %41 = math.exp %40 : vector<2x8xf32>
    %42 = arith.select %38, %35, %41 : vector<2x8xi1>, vector<2x8xf32>
    %c0_17 = arith.constant 0 : index
    %c0_18 = arith.constant 0 : index
    %43 = vector.load %arg8[%c0_17, %c0_18] : memref<2x8xf32, #tpu.memory_space<vmem>>, vector<2x8xf32>
    tpu.vector_store %arg8[%c0_17, %c0_18], %42 {strides = array<i32>} : memref<2x8xf32, #tpu.memory_space<vmem>>, vector<2x8xf32>,
    return
  }
  func.func @transform_0(%arg0: i32) -> (i32, i32) {
    %c0_i32 = arith.constant 0 : i32
    %c0_i32_0 = arith.constant 0 : i32
    return %c0_i32, %arg0 : i32, i32
  }
  func.func @transform_1(%arg0: i32) -> (i32, i32) {
    %c0_i32 = arith.constant 0 : i32
    %c0_i32_0 = arith.constant 0 : i32
    %c0_i32_1 = arith.constant 0 : i32
    return %c0_i32, %c0_i32_0 : i32, i32
  }
  func.func @transform_2(%arg0: i32) -> (i32, i32) {
    %c0_i32 = arith.constant 0 : i32
    %c0_i32_0 = arith.constant 0 : i32
    %c0_i32_1 = arith.constant 0 : i32
    return %c0_i32, %c0_i32_0 : i32, i32
  }
  func.func @transform_3(%arg0: i32) -> (i32, i32) {
    %c0_i32 = arith.constant 0 : i32
    %c0_i32_0 = arith.constant 0 : i32
    %c0_i32_1 = arith.constant 0 : i32
    return %c0_i32, %c0_i32_0 : i32, i32
  }
  func.func @transform_4(%arg0: i32) -> (i32, i32) {
    %c0_i32 = arith.constant 0 : i32
    %c0_i32_0 = arith.constant 0 : i32
    %c0_i32_1 = arith.constant 0 : i32
    return %c0_i32, %c0_i32_0 : i32, i32
  }
  func.func @transform_5(%arg0: i32) -> (i32, i32) {
    %c0_i32 = arith.constant 0 : i32
    %c0_i32_0 = arith.constant 0 : i32
    %c0_i32_1 = arith.constant 0 : i32
    return %c0_i32, %c0_i32_0 : i32, i32
  }
  func.func @transform_6(%arg0: i32) -> (i32, i32) {
    %c0_i32 = arith.constant 0 : i32
    %c0_i32_0 = arith.constant 0 : i32
    %c0_i32_1 = arith.constant 0 : i32
    return %c0_i32, %c0_i32_0 : i32, i32
  }
  func.func @transform_7(%arg0: i32) -> (i32, i32) {
    %c0_i32 = arith.constant 0 : i32
    %c0_i32_0 = arith.constant 0 : i32
    return %c0_i32, %arg0 : i32, i32
  }
}

</mosaic_0001>

<bundles_post_ra>
// kernel: policy_forward.1
= control target key start
LH: loop header
LB: loop body
LE: loop exit
PB: predicated region body
PF: predicated region fallthrough
CT: control target
= control target key end

     0   :  { %v584_v0 = vmov 0   ;;  %v585_v6 = vmov 1   ;;  %v586_v11 = vmov 2   ;;  %vm283_vm0 = vcmask 523264   ;;  %s773_s2 = inlined_call_operand.vmem [shape: f32[64,1], index: 2, kind: input, shape index: {}]   ;;  %s774_s1 = inlined_call_operand.vmem [shape: f32[64,3], index: 1, kind: input, shape index: {}]   ;;  %s775_s3 = inlined_call_operand.vmem [shape: f32[32,64], index: 3, kind: input, shape index: {}]   ;;  %s776_s4 = inlined_call_operand.vmem [shape: f32[32,1], index: 4, kind: input, shape index: {}]   ;;  %s777_s6 = inlined_call_operand.vmem [shape: f32[2,1], index: 6, kind: input, shape index: {}]   ;;  %s778_s0 = inlined_call_operand.vmem [shape: f32[3,8], index: 0, kind: input, shape index: {}]   ;;  %s779_s5 = inlined_call_operand.vmem [shape: f32[2,32], index: 5, kind: input, shape index: {}]   ;;  %s780_s7 = inlined_call_operand.vmem [shape: f32[2,8], index: 7, kind: output, shape index: {}]  }
   0x1   :  { %563 = vset.pattern.permute.xlu1 %v584_v0  ;;  %562 = vset.pattern.permute.xlu0 %v584_v0  ;;  %v35_v1 = vld [vmem:[%s773_s2] sm:$0xff]  ;;  %v36_v3 = vld [vmem:[%s773_s2 + $0x8] sm:$0xff]  ;;  %v30_v5 = vld [vmem:[%s774_s1 + $0x18] sm:$0xff]  ;;  %v83_v32 = vlaneseq  ;;  %vm588_vm1 = vmmov 0   ;;  %vm392_vm2 = vcmask 261120   ;;  %vm473_vm4 = vcmask 58368  }
   0x2   :  { %v27_v2 = vld [vmem:[%s774_s1] sm:$0xff]  ;;  %97 = vperm.xlu1 %563, %v35_v1   ;;  %v28_v4 = vld [vmem:[%s774_s1 + $0x8] sm:$0xff]  ;;  %v37_v7 = vld [vmem:[%s773_s2 + $0x10] sm:$0xff] }
   0x3   :  { %45 = vperm.xlu0 %562, %v27_v2   ;;  %v29_v8 = vld [vmem:[%s774_s1 + $0x10] sm:$0xff]  ;;  %v32_v9 = vld [vmem:[%s774_s1 + $0x28] sm:$0xff]  ;;  %v39_v10 = vld [vmem:[%s773_s2 + $0x20] sm:$0xff]  ;;  %v709_v35 = vshrl.u32 %v83_v32, 7 }
   0x4   :  { %v34_v12 = vld [vmem:[%s774_s1 + $0x38] sm:$0xff]  ;;  %v41_v14 = vld [vmem:[%s773_s2 + $0x30] sm:$0xff]  ;;  %v31_v15 = vld [vmem:[%s774_s1 + $0x20] sm:$0xff] }
   0x5   :  { %v38_v13 = vld [vmem:[%s773_s2 + $0x18] sm:$0xff]  ;;  %v33_v16 = vld [vmem:[%s774_s1 + $0x30] sm:$0xff]  ;;  %v40_v17 = vld [vmem:[%s773_s2 + $0x28] sm:$0xff]  ;;  %v85_v38 = vsub.s32 0, %v709_v35  ;;  %v177_v39 = vsub.s32 1, %v709_v35  ;;  %v229_v45 = vsub.s32 2, %v709_v35 }
   0x6   :  { %102 = vperm.xlu1 %563, %v36_v3   ;;  %v42_v18 = vld [vmem:[%s773_s2 + $0x38] sm:$0xff]  ;;  %v255_v19 = vld [vmem:[%s775_s3] sm:$0xff]  ;;  %v261_v21 = vld [vmem:[%s776_s4 + $0x10] sm:$0xff]  ;;  %vm468_vm3 = vcmp.lt.s32.totalorder %v709_v35, 1 }
   0x7   :  { %50 = vperm.xlu0 %562, %v28_v4   ;;  %517 = vmatprep.mubr.msk.f32.mxu0 %vm283_vm0, %v255_v19  ;;  %v259_v20 = vld [vmem:[%s776_s4] sm:$0xff]  ;;  %v260_v22 = vld [vmem:[%s776_s4 + $0x8] sm:$0xff]  ;;  %v262_v23 = vld [vmem:[%s776_s4 + $0x18] sm:$0xff] }
   0x8   :  { %v386_v24 = vld [vmem:[%s777_s6] sm:$0x3] }
   0x9   :  { %v26_v40 = vld [vmem:[%s778_s0] sm:$0x7] }
   0xa   :  { %564 = vset.pattern.permute.xlu1 %v585_v6  ;;  %v718_v43 = vrot.slane %v26_v40, %v85_v38  ;;  %v720_v44 = vrot.slane %v26_v40, %v177_v39  ;;  %v728_v51 = vrot.slane %v26_v40, %v229_v45 }
   0xb   :  { %60 = vperm.xlu0 %562, %v30_v5   ;;  %148 = vperm.xlu1 %564, %v28_v4  }
   0xf   :  { %107 = vperm.xlu0 %562, %v37_v7   ;;  %565 = vset.pattern.permute.xlu1 %v584_v0 }
  0x10   :  { %55 = vperm.xlu1 %565, %v29_v8  }
  0x13   :  { %70 = vperm.xlu0 %562, %v32_v9  }
  0x14   :  { %566 = vset.pattern.permute.xlu1 %v586_v11 }
  0x15   :  { %196 = vperm.xlu1 %566, %v27_v2  }
  0x17   :  { %117 = vperm.xlu0 %562, %v39_v10  }
  0x19   :  { %200 = vperm.xlu1 %566, %v28_v4  }
  0x1b   :  { %80 = vperm.xlu0 %562, %v34_v12  }
  0x1d   :  { %567 = vset.pattern.permute.xlu1 %v584_v0 }
  0x1e   :  { %112 = vperm.xlu1 %567, %v38_v13  }
  0x1f   :  { %127 = vperm.xlu0 %562, %v41_v14  }
  0x22   :  { %568 = vset.pattern.permute.xlu1 %v585_v6 }
  0x23   :  { %575 = vset.pattern.permute.xlu0 %v585_v6  ;;  %156 = vperm.xlu1 %568, %v30_v5  }
  0x24   :  { %144 = vperm.xlu0 %575, %v27_v2  }
  0x27   :  { %569 = vset.pattern.permute.xlu1 %v584_v0 }
  0x28   :  { %152 = vperm.xlu0 %575, %v29_v8   ;;  %65 = vperm.xlu1 %569, %v31_v15  }
  0x2c   :  { %160 = vperm.xlu0 %575, %v31_v15   ;;  %570 = vset.pattern.permute.xlu1 %v586_v11 }
  0x2d   :  { %204 = vperm.xlu1 %570, %v29_v8  }
  0x30   :  { %168 = vperm.xlu0 %575, %v33_v16  }
  0x31   :  { %208 = vperm.xlu1 %570, %v30_v5  }
  0x34   :  { %579 = vset.pattern.permute.xlu0 %v586_v11 }
  0x35   :  { %224 = vperm.xlu0 %579, %v34_v12   ;;  %571 = vset.pattern.permute.xlu1 %v584_v0 }
  0x36   :  { %122 = vperm.xlu1 %571, %v40_v17  }
  0x39   :  { %581 = vset.pattern.permute.xlu0 %v584_v0 }
  0x3a   :  { %572 = vset.pattern.permute.xlu1 %v585_v6  ;;  %275 = vperm.xlu0 %581, %v261_v21  }
  0x3b   :  { %164 = vperm.xlu1 %572, %v32_v9  }
  0x3f   :  { %573 = vset.pattern.permute.xlu1 %v584_v0 }
  0x40   :  { %75 = vperm.xlu1 %573, %v33_v16  }
  0x44   :  { %574 = vset.pattern.permute.xlu1 %v586_v11 }
  0x45   :  { %212 = vperm.xlu1 %574, %v31_v15  }
  0x49   :  { %216 = vperm.xlu1 %574, %v32_v9  }
  0x4d   :  { %576 = vset.pattern.permute.xlu1 %v584_v0 }
  0x4e   :  { %132 = vperm.xlu1 %576, %v42_v18  }
  0x52   :  { %577 = vset.pattern.permute.xlu1 %v585_v6 }
  0x53   :  { %172 = vperm.xlu1 %577, %v34_v12  }
  0x57   :  { %578 = vset.pattern.permute.xlu1 %v586_v11 }
  0x58   :  { %220 = vperm.xlu1 %578, %v33_v16  }
  0x5c   :  { %580 = vset.pattern.permute.xlu1 %v584_v0 }
  0x5d   :  { %265 = vperm.xlu1 %580, %v259_v20  }
  0x61   :  { %270 = vperm.xlu1 %580, %v260_v22  }
  0x65   :  { %280 = vperm.xlu1 %580, %v262_v23  }
  0x69   :  { %389 = vperm.xlu1 %580, %v386_v24  }
  0x81   :  { %v98_v25 = vpop.permute.xlu1 %97 }
  0x82   :  { %v46_v26 = vpop.permute.xlu0 %45 }
  0x83   :  { %v87_v49 = vmul.f32 %v718_v43, %v46_v26 }
  0x85   :  { %v103_v27 = vpop.permute.xlu1 %102  ;;  %v135_v56 = vadd.f32 %v98_v25, %v87_v49 }
  0x86   :  { %v51_v28 = vpop.permute.xlu0 %50 }
  0x87   :  { %v88_v46 = vmul.f32 %v718_v43, %v51_v28 }
  0x89   :  { %v136_v52 = vadd.f32 %v103_v27, %v88_v46 }
  0x8a   :  { %v61_v29 = vpop.permute.xlu0 %60  ;;  %v149_v30 = vpop.permute.xlu1 %148 }
  0x8b   :  { %v180_v50 = vmul.f32 %v720_v44, %v149_v30  ;;  %v90_v4 = vmul.f32 %v718_v43, %v61_v29 }
  0x8d   :  { %v188_v57 = vadd.f32 %v180_v50, %v136_v52 }
  0x8e   :  { %v108_v31 = vpop.permute.xlu0 %107 }
  0x8f   :  { %v56_v33 = vpop.permute.xlu1 %55 }
  0x90   :  { %v89_v1 = vmul.f32 %v718_v43, %v56_v33 }
  0x92   :  { %v707_v34 = vpop.permute.xlu0 %70  ;;  %v137_v8 = vadd.f32 %v108_v31, %v89_v1 }
  0x93   :  { %v92_v29 = vmul.f32 %v718_v43, %v707_v34 }
  0x94   :  { %v197_v36 = vpop.permute.xlu1 %196 }
  0x95   :  { %v231_v59 = vmul.f32 %v728_v51, %v197_v36 }
  0x96   :  { %v118_v37 = vpop.permute.xlu0 %117 }
  0x98   :  { %v201_v41 = vpop.permute.xlu1 %200 }
  0x99   :  { %v232_v53 = vmul.f32 %v728_v51, %v201_v41 }
  0x9a   :  { %v716_v42 = vpop.permute.xlu0 %80 }
  0x9b   :  { %v240_v60 = vadd.f32 %v232_v53, %v188_v57  ;;  %v94_v34 = vmul.f32 %v718_v43, %v716_v42 }
  0x9d   :  { %v113_v47 = vpop.permute.xlu1 %112  ;;  %v248_v2 = vmax.f32 %v240_v60, 0.0 }
  0x9e   :  { %v724_v48 = vpop.permute.xlu0 %127  ;;  %v138_v11 = vadd.f32 %v113_v47, %v90_v4 }
  0xa2   :  { %v157_v54 = vpop.permute.xlu1 %156 }
  0xa3   :  { %v145_v55 = vpop.permute.xlu0 %144  ;;  %v182_v9 = vmul.f32 %v720_v44, %v157_v54 }
  0xa4   :  { %v179_v58 = vmul.f32 %v720_v44, %v145_v55 }
  0xa5   :  { %v190_v14 = vadd.f32 %v182_v9, %v138_v11 }
  0xa6   :  { %v187_v61 = vadd.f32 %v179_v58, %v135_v56 }
  0xa7   :  { %v66_v62 = vpop.permute.xlu1 %65  ;;  %v153_v0 = vpop.permute.xlu0 %152 }
  0xa8   :  { %v239_v63 = vadd.f32 %v231_v59, %v187_v61  ;;  %v181_v5 = vmul.f32 %v720_v44, %v153_v0  ;;  %v91_v23 = vmul.f32 %v718_v43, %v66_v62 }
  0xaa   :  { %v247_v3 = vmax.f32 %v239_v63, 0.0  ;;  %v189_v12 = vadd.f32 %v181_v5, %v137_v8  ;;  %v139_v26 = vadd.f32 %v118_v37, %v91_v23 }
  0xab   :  { %v161_v25 = vpop.permute.xlu0 %160 }
  0xac   :  { %v534_v6 = vpack.c.bf16 %v248_v2, %v247_v3  ;;  %v205_v7 = vpop.permute.xlu1 %204  ;;  %v183_v27 = vmul.f32 %v720_v44, %v161_v25  ;;  %v587_v2 = vmov 0.0|0.0   ;;  %v589_v3 = vmov 0.0  }
  0xad   :  { %v233_v10 = vmul.f32 %v728_v51, %v205_v7  ;;  %550 = vmatprep.subr.bf16.mxu1 %v587_v2  ;;  %531 = vmatprep.mubr.msk.f32.mxu1 %vm588_vm1, %v589_v3 }
  0xae   :  { %535 = vmatprep.subr.bf16.mxu0 %v534_v6  ;;  %v191_v32 = vadd.f32 %v183_v27, %v139_v26 }
  0xaf   :  { %537 = vmatpush3.bf16.msra.mxu0 %v534_v6  ;;  %v241_v15 = vadd.f32 %v233_v10, %v189_v12  ;;  %v169_v45 = vpop.permute.xlu0 %168 }
  0xb0   :  { %v209_v13 = vpop.permute.xlu1 %208  ;;  %v185_v57 = vmul.f32 %v720_v44, %v169_v45 }
  0xb1   :  { %v234_v16 = vmul.f32 %v728_v51, %v209_v13  ;;  %v249_v18 = vmax.f32 %v241_v15, 0.0 }
  0xb3   :  { %v242_v17 = vadd.f32 %v234_v16, %v190_v14 }
  0xb4   :  { %v225_v52 = vpop.permute.xlu0 %224 }
  0xb5   :  { %v250_v19 = vmax.f32 %v242_v17, 0.0  ;;  %v123_v20 = vpop.permute.xlu1 %122  ;;  %v238_v58 = vmul.f32 %v728_v51, %v225_v52 }
  0xb6   :  { %v140_v33 = vadd.f32 %v123_v20, %v92_v29 }
  0xb7   :  { %v538_v21 = vpack.c.bf16 %v250_v19, %v249_v18 }
  0xb9   :  { %539 = vmatprep.subr.bf16.mxu0 %v538_v21  ;;  %v276_v11 = vpop.permute.xlu0 %275 }
  0xba   :  { %v165_v22 = vpop.permute.xlu1 %164  ;;  %541 = vmatpush3.bf16.msra.mxu0 %v538_v21 }
  0xbb   :  { %v184_v30 = vmul.f32 %v720_v44, %v165_v22  ;;  %v385_v22 = vld [vmem:[%s779_s5] sm:$0x3] }
  0xbd   :  { %v192_v38 = vadd.f32 %v184_v30, %v140_v33 }
  0xbf   :  { %v76_v24 = vpop.permute.xlu1 %75 }
  0xc0   :  { %v93_v50 = vmul.f32 %v718_v43, %v76_v24 }
  0xc2   :  { %v141_v56 = vadd.f32 %v724_v48, %v93_v50  ;;  %v256_v48 = vld [vmem:[%s775_s3 + $0x8] sm:$0xff] }
  0xc4   :  { %v213_v28 = vpop.permute.xlu1 %212  ;;  %v193_v61 = vadd.f32 %v185_v57, %v141_v56 }
  0xc5   :  { %v235_v31 = vmul.f32 %v728_v51, %v213_v28 }
  0xc7   :  { %v243_v39 = vadd.f32 %v235_v31, %v191_v32 }
  0xc8   :  { %v217_v36 = vpop.permute.xlu1 %216 }
  0xc9   :  { %v236_v40 = vmul.f32 %v728_v51, %v217_v36  ;;  %v251_v37 = vmax.f32 %v243_v39, 0.0 }
  0xcb   :  { %v244_v41 = vadd.f32 %v236_v40, %v192_v38 }
  0xcd   :  { %v252_v46 = vmax.f32 %v244_v41, 0.0  ;;  %v133_v47 = vpop.permute.xlu1 %132 }
  0xce   :  { %v142_v54 = vadd.f32 %v133_v47, %v94_v34 }
  0xcf   :  { %v542_v49 = vpack.c.bf16 %v252_v46, %v251_v37 }
  0xd1   :  { %543 = vmatprep.subr.bf16.mxu0 %v542_v49 }
  0xd2   :  { %v173_v53 = vpop.permute.xlu1 %172  ;;  %545 = vmatpush3.bf16.msra.mxu0 %v542_v49 }
  0xd3   :  { %v186_v55 = vmul.f32 %v720_v44, %v173_v53  ;;  %v257_v44 = vld [vmem:[%s775_s3 + $0x10] sm:$0xff] }
  0xd5   :  { %v194_v59 = vadd.f32 %v186_v55, %v142_v54 }
  0xd7   :  { %v221_v60 = vpop.permute.xlu1 %220  ;;  %v246_v62 = vadd.f32 %v238_v58, %v194_v59 }
  0xd8   :  { %v237_v63 = vmul.f32 %v728_v51, %v221_v60  ;;  %v258_v51 = vld [vmem:[%s775_s3 + $0x18] sm:$0xff] }
  0xd9   :  { %v254_v43 = vmax.f32 %v246_v62, 0.0 }
  0xda   :  { %v245_v42 = vadd.f32 %v237_v63, %v193_v61 }
  0xdc   :  { %v253_v0 = vmax.f32 %v245_v42, 0.0  ;;  %v266_v4 = vpop.permute.xlu1 %265 }
  0xde   :  { %v546_v1 = vpack.c.bf16 %v254_v43, %v253_v0 }
  0xe0   :  { %547 = vmatprep.subr.bf16.mxu0 %v546_v1  ;;  %v271_v5 = vpop.permute.xlu1 %270 }
  0xe1   :  { %549 = vmatpush3.bf16.msra.mxu0 %v546_v1 }
  0xe4   :  { %518 = vmatmul.mubr.msk.f32.vlgmr.msra.gmra.mrb[0].mxu0 %vm283_vm0, %v256_v48  ;;  %v281_v12 = vpop.permute.xlu1 %280 }
  0xe5   :  { %520 = vmatprep.mubr.msk.f32.mxu0 %vm283_vm0, %v257_v44 }
  0xe8   :  { %521 = vmatmul.mubr.msk.f32.gmra.mrb[2].mxu0 %vm283_vm0, %v258_v51  ;;  %v390_v23 = vpop.permute.xlu1 %389 }
 0x1b7   :  { %v519_v6 = vpop.f32.mrb[0].mxu0 }
 0x1b8   :  { %v368_v7 = vadd.f32 %v519_v6, %v271_v5  ;;  %v362_v8 = vpop.f32.mrb[1].mxu0 }
 0x1b9   :  { %v363_v9 = vadd.f32 %v362_v8, %v266_v4 }
 0x1ba   :  { %v382_v10 = vmax.f32 %v368_v7, 0.0 }
 0x1bb   :  { %v381_v13 = vmax.f32 %v363_v9, 0.0  ;;  %v522_v14 = vpop.f32.mrb[2].mxu0 }
 0x1bc   :  { %v378_v15 = vadd.f32 %v522_v14, %v281_v12  ;;  %v372_v16 = vpop.f32.mrb[3].mxu0 }
 0x1bd   :  { %v373_v17 = vadd.f32 %v372_v16, %v276_v11  ;;  %v551_v18 = vpack.c.bf16 %v382_v10, %v381_v13 }
 0x1be   :  { %v384_v19 = vmax.f32 %v378_v15, 0.0 }
 0x1bf   :  { %v383_v20 = vmax.f32 %v373_v17, 0.0  ;;  %552 = vmatpush3.bf16.msra.mxu1 %v551_v18 }
 0x1c0   :  { %553 = vmatprep.subr.bf16.mxu1 %v587_v2 }
 0x1c1   :  { %v554_v21 = vpack.c.bf16 %v384_v19, %v383_v20 }
 0x1c3   :  { %555 = vmatpush3.bf16.msra.mxu1 %v554_v21 }
 0x1c6   :  { %532 = vmatmul.mubr.msk.f32.vlgmr.msra.gmra.mrb[0].mxu1 %vm392_vm2, %v385_v22 }
 0x299   :  { %v462_v24 = vpop.f32.mrb[0].mxu1 }
 0x29a   :  { %v463_v25 = vadd.f32 %v462_v24, %v390_v23  ;;  %v533_v26 = vpop.f32.mrb[1].mxu1 }
 0x29c   :  { %v469_v27 = vsel %vm468_vm3, 0.0, %v463_v25 }
 0x29d   :  { %v470_v28 = vmul.f32 1.442695, %v469_v27 }
 0x29f   :  { %582 = vpow2.f32 %v470_v28 }
 0x2a9   :  { %v583_v29 = vpop.eup %582 }
 0x2aa   :  { %v472_v30 = vsel %vm468_vm3, %v463_v25, %v583_v29 }
 0x2ab   :  { %474 = vst.msk [vmem:[%s780_s7] sm:$0x3] %vm473_vm4, %v472_v30 }

</bundles_post_ra>
